<compile_context>
chip_gen: v7x
topology: tpu7x:2x2x1
jax: 0.10.0
libtpu: 0.0.40
codegen_flags: <defaults>
</compile_context>

<pallas_src>
import jax
import jax.numpy as jnp
from jax import lax
from jax.experimental import pallas as pl
from jax.experimental.pallas import tpu as pltpu


def _ref_math(x: jax.Array) -> jax.Array:
    """Fused-XLA fallback / small-input fast path (f32 accumulation)."""
    _, _, h, w = x.shape
    norm = jnp.sum(jnp.abs(x.astype(jnp.float32)), axis=(2, 3)) / float(h * w)
    return jnp.mean(norm).astype(x.dtype)


def _make_partial_kernel(rows, row_tile, sub, cols, chunk_factor, ragged):
    """Builds the per-block partial-sum kernel (all args are Python constants)."""
    n_chunks = (row_tile // sub) // chunk_factor
    chunk_rows = sub * chunk_factor

    def kernel(x_ref, o_ref):
        if ragged:
            # Rows of this block that lie inside the real input.  The DMA of a
            # ragged final block is clamped at the array bound; the rest of
            # the VMEM buffer is stale garbage and MUST be masked out.
            valid = rows - pl.program_id(0) * row_tile

        def body(i, acc):
            base = pl.multiple_of(i * chunk_rows, chunk_rows)
            for j in range(chunk_factor):            # static unroll
                r0 = base + j * sub
                blk = x_ref[pl.ds(r0, sub), :]       # (sub, cols), native dtype
                v = jnp.abs(blk).astype(jnp.float32)
                if ragged:
                    ridx = r0 + lax.broadcasted_iota(jnp.int32, (sub, 1), 0)
                    v = jnp.where(ridx < valid, v, 0.0)
                acc = acc + v
            return acc

        acc0 = jnp.zeros((sub, cols), jnp.float32)
        o_ref[...] = lax.fori_loop(0, n_chunks, body, acc0)

    return kernel


def l1_loss(x: jax.Array, *,
            target_block_bytes: int = 8 * 1024 * 1024,
            small_bytes: int = 512 * 1024) -> jax.Array:
    """Pallas implementation of L1_LOSS.forward for an NCHW input."""
    n, c, h, w = x.shape
    total = n * c * h * w
    itemsize = jnp.dtype(x.dtype).itemsize

    # Small-input fast path: pallas_call launch cost + separate finish-reduce
    # dominate below ~0.5 MiB; the fused XLA reduce is strictly faster there.
    if total * itemsize <= small_bytes:
        return _ref_math(x)

    # Lane-dense view width: largest of {512, 256, 128} that divides the
    # element count, so the reshape needs no pad / prefix copy.
    cols = next((cand for cand in (512, 256, 128) if total % cand == 0), None)
    # Sublane quantum for the dtype: f32 -> 8, bf16 -> 16, int8/fp8 -> 32.
    sub = max(8, 32 // max(1, itemsize))
    if cols is None or (total // cols) < sub:
        # TODO(synk): element counts not divisible by 128 would require either
        # a padded copy or a full-tensor prefix slice (an extra HBM round trip)
        # to feed the kernel; XLA's fused reduction is cheaper for that rare case.
        return _ref_math(x)

    rows = total // cols
    # Matches PyTorch only because every (n, c) slice has the same H*W count.
    inv_scale = 1.0 / (float(h * w) * float(n * c))

    # ---- tile sizing --------------------------------------------------------
    bytes_per_row = cols * itemsize
    cap = max(sub, (target_block_bytes // bytes_per_row) // sub * sub)
    num_tiles = pl.cdiv(rows, cap)
    # Keep the "parallel" grid axis evenly splittable across the two v7x
    # TensorCores (harmless on v5e/v6e).
    if num_tiles > 1 and num_tiles % 2 == 1:
        num_tiles += 1
    row_tile = pl.cdiv(pl.cdiv(rows, num_tiles), sub) * sub
    row_tile = max(sub, min(row_tile, (rows // sub) * sub))
    num_tiles = pl.cdiv(rows, row_tile)
    ragged = (rows % row_tile) != 0

    n_sub = row_tile // sub
    chunk_factor = next(cf for cf in (8, 4, 2, 1) if n_sub % cf == 0)

    # TODO(synk): verify with xprof that this reshape lowers to a bitcast (no
    # HBM relayout) for the production input layout; if XLA emits a relayout
    # copy, feed the native 4-D buffer via memory_space=pl.ANY + manual
    # contiguous DMA instead.
    x2d = x.reshape(rows, cols)

    kernel = _make_partial_kernel(rows, row_tile, sub, cols, chunk_factor, ragged)

    partials = pl.pallas_call(
        kernel,
        out_shape=jax.ShapeDtypeStruct((num_tiles * sub, cols), jnp.float32),
        grid_spec=pltpu.PrefetchScalarGridSpec(
            num_scalar_prefetch=0,
            grid=(num_tiles,),
            in_specs=[pl.BlockSpec((row_tile, cols), lambda k: (k, 0))],
            out_specs=pl.BlockSpec((sub, cols), lambda k: (k, 0)),
        ),
        compiler_params=pltpu.CompilerParams(
            # Independent output block per step -> megacore-shardable (v7x).
            dimension_semantics=("parallel",),
            # 2 x 8 MiB double-buffered input + tiny outputs: above the v5e
            # 16 MiB scoped default, well under physical VMEM on every gen.
            vmem_limit_bytes=40 * 1024 * 1024,
        ),
        cost_estimate=pl.CostEstimate(
            flops=2 * rows * cols,
            transcendentals=0,
            bytes_accessed=rows * cols * itemsize + num_tiles * sub * cols * 4,
        ),
    )(x2d)

    # Tiny cross-lane finish + scaling outside the kernel.
    return (jnp.sum(partials) * jnp.float32(inv_scale)).astype(x.dtype)


def l1_loss_ref(x: jax.Array) -> jax.Array:
    """Pure-JAX reference mirroring the PyTorch module."""
    _, _, h, w = x.shape
    norm = jnp.sum(jnp.abs(x), axis=(2, 3)) / (h * w)
    return jnp.mean(norm)


if __name__ == "__main__":
    key = jax.random.PRNGKey(0)
    k1, k2, k3, k4 = jax.random.split(key, 4)

    # 1) Tiny input (module's typical test shape) -> small-input fast path.
    x1 = jax.random.normal(k1, (2, 4, 16, 16), dtype=jnp.float32)
    out1 = jax.block_until_ready(l1_loss(x1))
    ref1 = jax.block_until_ready(l1_loss_ref(x1))
    assert out1.shape == ()
    assert jnp.allclose(out1, ref1, rtol=1e-5, atol=1e-6), (out1, ref1)

    # 2) Large enough for the Pallas path (single aligned block, no masking).
    x2 = jax.random.normal(k2, (4, 8, 128, 128), dtype=jnp.float32)
    out2 = jax.block_until_ready(l1_loss(x2))
    ref2 = jax.block_until_ready(l1_loss_ref(x2))
    assert jnp.allclose(out2, ref2, rtol=1e-4, atol=1e-6), (out2, ref2)

    # 3) Pallas path with a ragged final block (exercises in-kernel masking).
    x3 = jax.random.normal(k3, (2, 3, 40, 64), dtype=jnp.float32)
    out3 = jax.block_until_ready(
        l1_loss(x3, target_block_bytes=32 * 1024, small_bytes=0))
    ref3 = jax.block_until_ready(l1_loss_ref(x3))
    assert jnp.allclose(out3, ref3, rtol=1e-4, atol=1e-6), (out3, ref3)

    # 4) bf16 input (16-row sublane packing path).
    x4 = jax.random.normal(k4, (2, 8, 64, 128), dtype=jnp.bfloat16)
    out4 = jax.block_until_ready(l1_loss(x4, small_bytes=0))
    ref4 = jax.block_until_ready(l1_loss_ref(x4.astype(jnp.float32)))
    assert jnp.allclose(out4.astype(jnp.float32), ref4, rtol=2e-2, atol=1e-3), (out4, ref4)

    print("KERNEL_OK")
</pallas_src>

<mosaic_0001>
module attributes {stable_mosaic.version = 11 : i64} {
  func.func @kernel(%arg0: i32, %arg1: memref<1024x512xf32, #tpu.memory_space<vmem>>, %arg2: memref<8x512xf32, #tpu.memory_space<vmem>>) attributes {dimension_semantics = [#tpu.dimension_semantics<parallel>], iteration_bounds = array<i64: 1>, scalar_prefetch = 0 : i64, scratch_operands = 0 : i64, tpu.core_type = #tpu.core_type<tc>, window_params = [{transform_indices = @transform_0, window_bounds = array<i64: 1024, 512>}, {transform_indices = @transform_1, window_bounds = array<i64: 8, 512>}]} {
    %cst = arith.constant 0.000000e+00 : f32
    %0 = vector.broadcast %cst : f32 to vector<8x512xf32>
    %c0_i32 = arith.constant 0 : i32
    %c16_i32 = arith.constant 16 : i32
    %1 = arith.addi %c0_i32, %c16_i32 : i32
    %c1_i32 = arith.constant 1 : i32
    %2 = scf.for %arg3 = %c0_i32 to %1 step %c1_i32 iter_args(%arg4 = %0) -> (vector<8x512xf32>)  : i32 {
      %c64_i32 = arith.constant 64 : i32
      %4 = arith.muli %arg3, %c64_i32 : i32
      %5 = tpu.assume_multiple %4, 64 : i32
      %c0_i32_2 = arith.constant 0 : i32
      %6 = arith.addi %5, %c0_i32_2 : i32
      %7 = arith.index_cast %6 : i32 to index
      %c0_3 = arith.constant 0 : index
      %8 = vector.load %arg1[%7, %c0_3] : memref<1024x512xf32, #tpu.memory_space<vmem>>, vector<8x512xf32>
      %9 = math.absf %8 : vector<8x512xf32>
      %10 = arith.addf %arg4, %9 : vector<8x512xf32>
      %c8_i32 = arith.constant 8 : i32
      %11 = arith.addi %5, %c8_i32 : i32
      %12 = arith.index_cast %11 : i32 to index
      %c0_4 = arith.constant 0 : index
      %13 = vector.load %arg1[%12, %c0_4] : memref<1024x512xf32, #tpu.memory_space<vmem>>, vector<8x512xf32>
      %14 = math.absf %13 : vector<8x512xf32>
      %15 = arith.addf %10, %14 : vector<8x512xf32>
      %c16_i32_5 = arith.constant 16 : i32
      %16 = arith.addi %5, %c16_i32_5 : i32
      %17 = arith.index_cast %16 : i32 to index
      %c0_6 = arith.constant 0 : index
      %18 = vector.load %arg1[%17, %c0_6] : memref<1024x512xf32, #tpu.memory_space<vmem>>, vector<8x512xf32>
      %19 = math.absf %18 : vector<8x512xf32>
      %20 = arith.addf %15, %19 : vector<8x512xf32>
      %c24_i32 = arith.constant 24 : i32
      %21 = arith.addi %5, %c24_i32 : i32
      %22 = arith.index_cast %21 : i32 to index
      %c0_7 = arith.constant 0 : index
      %23 = vector.load %arg1[%22, %c0_7] : memref<1024x512xf32, #tpu.memory_space<vmem>>, vector<8x512xf32>
      %24 = math.absf %23 : vector<8x512xf32>
      %25 = arith.addf %20, %24 : vector<8x512xf32>
      %c32_i32 = arith.constant 32 : i32
      %26 = arith.addi %5, %c32_i32 : i32
      %27 = arith.index_cast %26 : i32 to index
      %c0_8 = arith.constant 0 : index
      %28 = vector.load %arg1[%27, %c0_8] : memref<1024x512xf32, #tpu.memory_space<vmem>>, vector<8x512xf32>
      %29 = math.absf %28 : vector<8x512xf32>
      %30 = arith.addf %25, %29 : vector<8x512xf32>
      %c40_i32 = arith.constant 40 : i32
      %31 = arith.addi %5, %c40_i32 : i32
      %32 = arith.index_cast %31 : i32 to index
      %c0_9 = arith.constant 0 : index
      %33 = vector.load %arg1[%32, %c0_9] : memref<1024x512xf32, #tpu.memory_space<vmem>>, vector<8x512xf32>
      %34 = math.absf %33 : vector<8x512xf32>
      %35 = arith.addf %30, %34 : vector<8x512xf32>
      %c48_i32 = arith.constant 48 : i32
      %36 = arith.addi %5, %c48_i32 : i32
      %37 = arith.index_cast %36 : i32 to index
      %c0_10 = arith.constant 0 : index
      %38 = vector.load %arg1[%37, %c0_10] : memref<1024x512xf32, #tpu.memory_space<vmem>>, vector<8x512xf32>
      %39 = math.absf %38 : vector<8x512xf32>
      %40 = arith.addf %35, %39 : vector<8x512xf32>
      %c56_i32 = arith.constant 56 : i32
      %41 = arith.addi %5, %c56_i32 : i32
      %42 = arith.index_cast %41 : i32 to index
      %c0_11 = arith.constant 0 : index
      %43 = vector.load %arg1[%42, %c0_11] : memref<1024x512xf32, #tpu.memory_space<vmem>>, vector<8x512xf32>
      %44 = math.absf %43 : vector<8x512xf32>
      %45 = arith.addf %40, %44 : vector<8x512xf32>
      scf.yield %45 : vector<8x512xf32>
    }
    %c16_i32_0 = arith.constant 16 : i32
    %c0 = arith.constant 0 : index
    %c0_1 = arith.constant 0 : index
    %3 = vector.load %arg2[%c0, %c0_1] : memref<8x512xf32, #tpu.memory_space<vmem>>, vector<8x512xf32>
    tpu.vector_store %arg2[%c0, %c0_1], %2 {strides = array<i32>} : memref<8x512xf32, #tpu.memory_space<vmem>>, vector<8x512xf32>,
    return
  }
  func.func @transform_0(%arg0: i32) -> (i32, i32) {
    %c0_i32 = arith.constant 0 : i32
    %c0_i32_0 = arith.constant 0 : i32
    return %arg0, %c0_i32 : i32, i32
  }
  func.func @transform_1(%arg0: i32) -> (i32, i32) {
    %c0_i32 = arith.constant 0 : i32
    %c0_i32_0 = arith.constant 0 : i32
    return %arg0, %c0_i32 : i32, i32
  }
}

</mosaic_0001>

<bundles_post_ra>
// kernel: tpu_custom_call.1
= control target key start
LH: loop header
LB: loop body
LE: loop exit
PB: predicated region body
PF: predicated region fallthrough
CT: control target
= control target key end

     0   :  { %6 = vsyncpa [#allocation3], 0  ;;  %s463_s0 = inlined_call_operand.hbm [shape: f32[1024,512], index: 0, kind: input, shape index: {}]   ;;  %s464_s1 = inlined_call_operand.hbm [shape: f32[8,512], index: 1, kind: output, shape index: {}]  }
   0x1   :  { %7 = vsyncpa [#allocation4], 0  ;;  %s386_s6 = smov [#allocation2]   ;;  %s298_s10 = scalar_lea.hbm %s463_s0, 65536 }
   0x2   :  { %s13_s7 = sshll.u32 %s386_s6, 4  ;;  %p299_p0 = scmp.ne.s32.totalorder %s463_s0, %s298_s10  ;;  %s14_s7 = int_to_ptr.vmem [resolvable:$true] %s13_s7 }
   0x3   :  { %p302_p1 = scmp.lt.u32.totalorder %s298_s10, %s463_s0 }
   0x5   :  { %p304_p2 = pnand %p302_p1, %p299_p0 }
   0x7   :  { %307 = shalt.err (!%p304_p2)
}
   0x8   :  { %s308_s15 = scalar_lea.vmem %s14_s7, 65536  ;;  %p313_p4 = scmp.lt.s32.totalorder %s14_s7, %s14_s7 }
   0x9   :  { %p309_p3 = scmp.ne.s32.totalorder %s14_s7, %s308_s15  ;;  %p314_p5 = scmp.lt.s32.totalorder %s308_s15, %s308_s15 }
   0xb   :  { %p315_p6 = por %p314_p5, %p313_p4 }
   0xd   :  { %p316_p7 = pnand %p315_p6, %p309_p3 }
   0xf   :  { %319 = shalt.err (!%p316_p7)
}
  0x10   :  { %s387_s16 = smov 512   ;;  %s388_s17 = smov 32  }
  0x11   :  { %19 = dma.hbm_to_vmem [thread:$0]  %s463_s0, 65536, %s14_s7, [#allocation3], %s387_s16, %s387_s16, %s388_s17  }
  0x12   :  { %362 = dma.done.wait [#allocation3], 65536  }
  0x13   :  { %363 = vsyncadd [#allocation3], 4294901760  ;;  %v412_v0 = vmov 0.0   ;;  %v414_v1 = vmov 0.0   ;;  %v416_v2 = vmov 0.0   ;;  %v418_v3 = vmov 0.0  }
  0x14   :  { %s420_s20 = smov 0  }
  0x15 LB: > { %s430_s0 = sshll.u32 %s384_s20, 6  ;;  %s28_s20 = sadd.s32 1, %s384_s20   ;;  %s384_s20 = sphi %s420_s20, %s28_s20   ;;  %v380_v3 = vphi %v418_v3, %v468_v3   ;;  %v376_v2 = vphi %v416_v2, %v467_v2   ;;  %v372_v1 = vphi %v414_v1, %v466_v1   ;;  %v368_v0 = vphi %v412_v0, %v465_v0  }
  0x16   : > { %s34_s21 = sshra.s32 %s430_s0, 3  ;;  %s51_s22 = sadd.s32 8, %s430_s0 }
  0x17   : > { %s246_s23 = sshll.u32 %s34_s21, 5  ;;  %s52_s24 = sshra.s32 %s51_s22, 3 }
  0x18   : > { %s247_s25 = sshll.u32 %s52_s24, 5  ;;  %s38_s26 = scalar_lea.vmem [#allocation2], %s246_s23 }
  0x19   : > { %v39_v4 = vld [vmem:[%s38_s26] sm:$0xff]  ;;  %v40_v5 = vld [vmem:[%s38_s26 + $0x8] sm:$0xff]  ;;  %v41_v6 = vld [vmem:[%s38_s26 + $0x10] sm:$0xff]  ;;  %s69_s27 = sadd.s32 16, %s430_s0  ;;  %s56_s28 = scalar_lea.vmem [#allocation2], %s247_s25 }
  0x1a   : > { %v42_v7 = vld [vmem:[%s38_s26 + $0x18] sm:$0xff]  ;;  %v43_v8 = vand.u32 2147483647, %v39_v4  ;;  %v44_v9 = vand.u32 2147483647, %v40_v5  ;;  %v57_v10 = vld [vmem:[%s56_s28] sm:$0xff] }
  0x1b   : > { %v45_v11 = vand.u32 2147483647, %v41_v6  ;;  %v46_v12 = vand.u32 2147483647, %v42_v7  ;;  %v58_v13 = vld [vmem:[%s56_s28 + $0x8] sm:$0xff]  ;;  %v59_v14 = vld [vmem:[%s56_s28 + $0x10] sm:$0xff] }
  0x1c   : > { %v47_v15 = vadd.f32 %v380_v3, %v43_v8  ;;  %v48_v16 = vadd.f32 %v376_v2, %v44_v9  ;;  %v60_v17 = vld [vmem:[%s56_s28 + $0x18] sm:$0xff]  ;;  %v61_v18 = vand.u32 2147483647, %v57_v10  ;;  %v62_v19 = vand.u32 2147483647, %v58_v13  ;;  %s70_s29 = sshra.s32 %s69_s27, 3 }
  0x1d   : > { %v49_v20 = vadd.f32 %v372_v1, %v45_v11  ;;  %v50_v21 = vadd.f32 %v368_v0, %v46_v12  ;;  %v63_v22 = vand.u32 2147483647, %v59_v14  ;;  %v64_v23 = vand.u32 2147483647, %v60_v17  ;;  %s248_s30 = sshll.u32 %s70_s29, 5  ;;  %s87_s2 = sadd.s32 24, %s430_s0 }
  0x1e   : > { %v65_v24 = vadd.f32 %v61_v18, %v47_v15  ;;  %v66_v25 = vadd.f32 %v62_v19, %v48_v16  ;;  %s88_s3 = sshra.s32 %s87_s2, 3  ;;  %s74_s4 = scalar_lea.vmem [#allocation2], %s248_s30 }
  0x1f   : > { %v67_v26 = vadd.f32 %v63_v22, %v49_v20  ;;  %v68_v27 = vadd.f32 %v64_v23, %v50_v21  ;;  %v75_v28 = vld [vmem:[%s74_s4] sm:$0xff]  ;;  %v76_v29 = vld [vmem:[%s74_s4 + $0x8] sm:$0xff]  ;;  %v77_v30 = vld [vmem:[%s74_s4 + $0x10] sm:$0xff]  ;;  %s249_s5 = sshll.u32 %s88_s3, 5  ;;  %s105_s6 = sadd.s32 32, %s430_s0 }
  0x20   : > { %v78_v31 = vld [vmem:[%s74_s4 + $0x18] sm:$0xff]  ;;  %v79_v32 = vand.u32 2147483647, %v75_v28  ;;  %v80_v33 = vand.u32 2147483647, %v76_v29  ;;  %s92_s7 = scalar_lea.vmem [#allocation2], %s249_s5 }
  0x21   : > { %v81_v34 = vand.u32 2147483647, %v77_v30  ;;  %v82_v35 = vand.u32 2147483647, %v78_v31  ;;  %v93_v36 = vld [vmem:[%s92_s7] sm:$0xff]  ;;  %v94_v37 = vld [vmem:[%s92_s7 + $0x8] sm:$0xff] }
  0x22   : > { %v83_v38 = vadd.f32 %v79_v32, %v65_v24  ;;  %v84_v39 = vadd.f32 %v80_v33, %v66_v25  ;;  %v95_v40 = vld [vmem:[%s92_s7 + $0x10] sm:$0xff]  ;;  %v96_v41 = vld [vmem:[%s92_s7 + $0x18] sm:$0xff]  ;;  %v97_v42 = vand.u32 2147483647, %v93_v36  ;;  %v98_v43 = vand.u32 2147483647, %v94_v37 }
  0x23   : > { %v85_v44 = vadd.f32 %v81_v34, %v67_v26  ;;  %v86_v45 = vadd.f32 %v82_v35, %v68_v27  ;;  %v99_v46 = vand.u32 2147483647, %v95_v40  ;;  %v100_v47 = vand.u32 2147483647, %v96_v41  ;;  %s106_s8 = sshra.s32 %s105_s6, 3  ;;  %s123_s9 = sadd.s32 40, %s430_s0 }
  0x24   : > { %s250_s10 = sshll.u32 %s106_s8, 5  ;;  %s124_s11 = sshra.s32 %s123_s9, 3  ;;  %v101_v48 = vadd.f32 %v97_v42, %v83_v38  ;;  %v102_v49 = vadd.f32 %v98_v43, %v84_v39 }
  0x25   : > { %s251_s12 = sshll.u32 %s124_s11, 5  ;;  %v103_v50 = vadd.f32 %v99_v46, %v85_v44  ;;  %v104_v51 = vadd.f32 %v100_v47, %v86_v45  ;;  %s110_s13 = scalar_lea.vmem [#allocation2], %s250_s10 }
  0x26   : > { %v111_v52 = vld [vmem:[%s110_s13] sm:$0xff]  ;;  %v112_v53 = vld [vmem:[%s110_s13 + $0x8] sm:$0xff]  ;;  %v113_v54 = vld [vmem:[%s110_s13 + $0x10] sm:$0xff]  ;;  %s141_s14 = sadd.s32 48, %s430_s0  ;;  %s128_s15 = scalar_lea.vmem [#allocation2], %s251_s12 }
  0x27   : > { %v114_v55 = vld [vmem:[%s110_s13 + $0x18] sm:$0xff]  ;;  %v115_v56 = vand.u32 2147483647, %v111_v52  ;;  %v116_v57 = vand.u32 2147483647, %v112_v53  ;;  %v129_v58 = vld [vmem:[%s128_s15] sm:$0xff] }
  0x28   : > { %v117_v59 = vand.u32 2147483647, %v113_v54  ;;  %v118_v60 = vand.u32 2147483647, %v114_v55  ;;  %v130_v61 = vld [vmem:[%s128_s15 + $0x8] sm:$0xff]  ;;  %v131_v62 = vld [vmem:[%s128_s15 + $0x10] sm:$0xff] }
  0x29   : > { %v119_v63 = vadd.f32 %v115_v56, %v101_v48  ;;  %v120_v0 = vadd.f32 %v116_v57, %v102_v49  ;;  %v132_v1 = vld [vmem:[%s128_s15 + $0x18] sm:$0xff]  ;;  %v133_v2 = vand.u32 2147483647, %v129_v58  ;;  %v134_v3 = vand.u32 2147483647, %v130_v61  ;;  %s142_s16 = sshra.s32 %s141_s14, 3 }
  0x2a   : > { %v121_v4 = vadd.f32 %v117_v59, %v103_v50  ;;  %v122_v5 = vadd.f32 %v118_v60, %v104_v51  ;;  %v135_v6 = vand.u32 2147483647, %v131_v62  ;;  %v136_v7 = vand.u32 2147483647, %v132_v1  ;;  %s252_s17 = sshll.u32 %s142_s16, 5  ;;  %s159_s18 = sadd.s32 56, %s430_s0 }
  0x2b   : > { %v137_v8 = vadd.f32 %v133_v2, %v119_v63  ;;  %v138_v9 = vadd.f32 %v134_v3, %v120_v0  ;;  %s160_s19 = sshra.s32 %s159_s18, 3  ;;  %s146_s21 = scalar_lea.vmem [#allocation2], %s252_s17 }
  0x2c   : > { %v139_v10 = vadd.f32 %v135_v6, %v121_v4  ;;  %v140_v11 = vadd.f32 %v136_v7, %v122_v5  ;;  %v147_v12 = vld [vmem:[%s146_s21] sm:$0xff]  ;;  %v148_v13 = vld [vmem:[%s146_s21 + $0x8] sm:$0xff]  ;;  %v149_v14 = vld [vmem:[%s146_s21 + $0x10] sm:$0xff]  ;;  %s253_s22 = sshll.u32 %s160_s19, 5  ;;  %p25_p8 = scmp.ge.s32.totalorder %s28_s20, 16  }
  0x2d   : > { %v150_v15 = vld [vmem:[%s146_s21 + $0x18] sm:$0xff]  ;;  %v151_v16 = vand.u32 2147483647, %v147_v12  ;;  %v152_v17 = vand.u32 2147483647, %v148_v13  ;;  %s164_s23 = scalar_lea.vmem [#allocation2], %s253_s22 }
  0x2e   : > { %v153_v18 = vand.u32 2147483647, %v149_v14  ;;  %v154_v19 = vand.u32 2147483647, %v150_v15  ;;  %v165_v20 = vld [vmem:[%s164_s23] sm:$0xff]  ;;  %v166_v21 = vld [vmem:[%s164_s23 + $0x8] sm:$0xff] }
  0x2f   : > { %v155_v22 = vadd.f32 %v151_v16, %v137_v8  ;;  %v156_v23 = vadd.f32 %v152_v17, %v138_v9  ;;  %v167_v24 = vld [vmem:[%s164_s23 + $0x10] sm:$0xff]  ;;  %v168_v25 = vld [vmem:[%s164_s23 + $0x18] sm:$0xff]  ;;  %v169_v26 = vand.u32 2147483647, %v165_v20  ;;  %v170_v27 = vand.u32 2147483647, %v166_v21 }
  0x30   : > { %v157_v28 = vadd.f32 %v153_v18, %v139_v10  ;;  %v158_v29 = vadd.f32 %v154_v19, %v140_v11  ;;  %v171_v30 = vand.u32 2147483647, %v167_v24  ;;  %v172_v31 = vand.u32 2147483647, %v168_v25  ;;  %27 = sbr.rel (!%p25_p8) target bundleno = 21 (0x15), region = 43  ;;  %s389_s0 = smov (%p25_p8), [#allocation5]  }
  0x31   : > { %v173_v32 = vadd.f32 %v169_v26, %v155_v22   ;;  %v174_v33 = vadd.f32 %v170_v27, %v156_v23   ;;  %s187_s24 = sshll.u32 (%p25_p8), %s389_s0, 4  ;;  %s188_s24 = int_to_ptr.vmem [resolvable:$true] %s187_s24 }
  0x32   : > { %v175_v34 = vadd.f32 %v171_v30, %v157_v28   ;;  %v176_v35 = vadd.f32 %v172_v31, %v158_v29   ;;  %s320_s25 = scalar_lea.vmem (%p25_p8), %s188_s24, 512  ;;  %p325_p10 = scmp.lt.s32.totalorder (%p25_p8), %s188_s24, %s188_s24 }
  0x33   : > { %v467_v2 = vmov %v174_v33  ;;  %v468_v3 = vmov %v173_v32  ;;  %177 = vst [vmem:[#allocation5] sm:$0xff] (%p25_p8), %v173_v32  ;;  %178 = vst [vmem:[#allocation5 + $0x8] sm:$0xff] (%p25_p8), %v174_v33  ;;  %p321_p9 = scmp.ne.s32.totalorder (%p25_p8), %s188_s24, %s320_s25  ;;  %p326_p11 = scmp.lt.s32.totalorder (%p25_p8), %s320_s25, %s320_s25 }
  0x34   : > { %v465_v0 = vmov %v176_v35  ;;  %v466_v1 = vmov %v175_v34  ;;  %179 = vst [vmem:[#allocation5 + $0x10] sm:$0xff] (%p25_p8), %v175_v34  ;;  %180 = vst [vmem:[#allocation5 + $0x18] sm:$0xff] (%p25_p8), %v176_v35 }
  0x35   :  { %p327_p12 = por (%p25_p8), %p326_p11, %p325_p10 }
  0x37   :  { %p328_p13 = pnand %p327_p12, %p321_p9 }
  0x39   :  { %331 = shalt.err (!%p328_p13)
}
  0x3a   :  { %s332_s28 = scalar_lea.hbm %s464_s1, 512 }
  0x3b   :  { %p333_p0 = scmp.ne.s32.totalorder %s464_s1, %s332_s28  ;;  %p336_p1 = scmp.lt.u32.totalorder %s332_s28, %s464_s1 }
  0x3d   :  { %p338_p2 = pnand %p336_p1, %p333_p0 }
  0x3f   :  { %341 = shalt.err (!%p338_p2)
}
  0x40   :  { %190 = dma.vmem_to_hbm [thread:$0]  %s188_s24, 512, %s464_s1, [#allocation4]  }
  0x41   :  { %364 = dma.done.wait [#allocation4], 512  }
  0x42   :  { %365 = vsyncadd [#allocation4], 4294966784 }
  0x43   :  { %194 = vsyncpa [#allocation3], 1 }
  0x44   :  { %195 = vsyncpa [#allocation4], 1 }

</bundles_post_ra>
